<compile_context>
chip_gen: v7x
topology: tpu7x:2x2x1
jax: 0.10.0
libtpu: 0.0.40
codegen_flags: <defaults>
</compile_context>

<pallas_src>
import math

import jax
import jax.numpy as jnp
from jax.experimental import pallas as pl
from jax.experimental.pallas import tpu as pltpu


# ---------------------------------------------------------------------------
# Shape bookkeeping (torch.Tensor.view semantics, incl. a single -1 entry).
# ---------------------------------------------------------------------------
def _resolve_shape(total, shape):
    shape = list(shape)
    if shape.count(-1) > 1:
        raise ValueError("only one dimension can be -1")
    if -1 in shape:
        known = 1
        for s in shape:
            if s != -1:
                known *= s
        if known == 0 or total % known != 0:
            raise ValueError(f"cannot view size {total} as shape {tuple(shape)}")
        shape[shape.index(-1)] = total // known
    if math.prod(shape) != total:
        raise ValueError(f"cannot view size {total} as shape {tuple(shape)}")
    return tuple(shape)


def _vmem_capacity_bytes():
    try:
        return int(pltpu.get_tpu_info().vmem_capacity_bytes)
    except Exception:
        return 64 << 20  # assume the tightest generation (v7x) if the query fails


def _pick_lane_width(total, sublane, max_lane):
    """Largest lane-dense width (multiple of 128) dividing `total` such that the
    row count is a multiple of the packed sublane count (tile-aligned chunks)."""
    for cand in (32768, 16384, 8192, 4096, 2048, 1024, 512, 256, 128):
        if cand <= max_lane and total % cand == 0:
            rows = total // cand
            if rows >= sublane and rows % sublane == 0:
                return cand
    return 128  # always valid on the aligned path (total % (sublane*128) == 0)


# ---------------------------------------------------------------------------
# Forced-copy implementation 1: direct HBM->HBM DMA (no VMEM round trip).
# ---------------------------------------------------------------------------
def _dma_copy(x, chunks=None):
    """Copy `x` HBM->HBM.  `chunks` is a static list of (row_start, row_count)
    for a 2-D slab, or None for a single whole-buffer DMA."""
    n = len(chunks) if chunks is not None else 1
    itemsize = jnp.dtype(x.dtype).itemsize

    def kernel(x_hbm, o_hbm, sems):
        copies = []
        if chunks is None:
            cp = pltpu.make_async_copy(x_hbm, o_hbm, sems.at[0])
            cp.start()
            copies.append(cp)
        else:
            for c, (start, size) in enumerate(chunks):
                cp = pltpu.make_async_copy(
                    x_hbm.at[pl.ds(start, size)],
                    o_hbm.at[pl.ds(start, size)],
                    sems.at[c],
                )
                cp.start()
                copies.append(cp)
        for cp in copies:
            cp.wait()

    return pl.pallas_call(
        kernel,
        out_shape=jax.ShapeDtypeStruct(x.shape, x.dtype),
        in_specs=[pl.BlockSpec(memory_space=pl.ANY)],
        out_specs=pl.BlockSpec(memory_space=pl.ANY),
        scratch_shapes=[pltpu.SemaphoreType.DMA((n,))],
        cost_estimate=pl.CostEstimate(
            flops=0, transcendentals=0, bytes_accessed=2 * x.size * itemsize
        ),
    )(x)


# ---------------------------------------------------------------------------
# Forced-copy implementation 2: BlockSpec-pipelined VMEM copy.
# ---------------------------------------------------------------------------
def _copy_kernel(x_ref, o_ref):
    # Pure identity copy of the current VMEM tile (keep it free of any
    # elementwise work -- the copy must stay HBM-bound on every generation).
    o_ref[...] = x_ref[...]


def _vmem_pipelined_copy(slab, sublane, target_block_bytes, vmem_cap, donate):
    rows, width = slab.shape
    itemsize = jnp.dtype(slab.dtype).itemsize

    # Generation-aware block cap: the pipeline holds ~4 buffers (2 in + 2 out),
    # so keep block_bytes <= vmem_cap / 8 and set the scoped limit explicitly.
    block_bytes = min(target_block_bytes, vmem_cap // 8)
    max_rows = max(sublane, (block_bytes // (width * itemsize)) // sublane * sublane)

    # rows_per_block: a divisor of rows (multiple of the packed sublane count)
    # so the last block is never partial/masked; prefer >=2 grid steps so a
    # megacore part can split the "parallel" axis across both TensorCores.
    candidates = [
        d for d in range(sublane, rows + 1, sublane)
        if rows % d == 0 and d <= max_rows
    ]
    if not candidates:
        rows_per_block = rows
    else:
        multi = [d for d in candidates if rows // d >= 2]
        rows_per_block = max(multi) if multi else max(candidates)

    grid = (rows // rows_per_block,)
    vmem_limit = min(
        3 * vmem_cap // 4,
        max(32 << 20, 4 * rows_per_block * width * itemsize + (4 << 20)),
    )

    return pl.pallas_call(
        _copy_kernel,
        out_shape=jax.ShapeDtypeStruct((rows, width), slab.dtype),
        grid_spec=pltpu.PrefetchScalarGridSpec(
            num_scalar_prefetch=0,
            grid=grid,
            in_specs=[pl.BlockSpec((rows_per_block, width), lambda i: (i, 0))],
            out_specs=pl.BlockSpec((rows_per_block, width), lambda i: (i, 0)),
        ),
        compiler_params=pltpu.CompilerParams(
            dimension_semantics=("parallel",),
            vmem_limit_bytes=int(vmem_limit),
        ),
        cost_estimate=pl.CostEstimate(
            flops=0, transcendentals=0, bytes_accessed=2 * rows * width * itemsize
        ),
        input_output_aliases=({0: 0} if donate else {}),
    )(slab)


# ---------------------------------------------------------------------------
# Public entry point.
# ---------------------------------------------------------------------------
def pallas_reshape(
    x,
    shape,
    *,
    force_copy=False,
    copy_impl="dma",
    target_block_bytes=8 << 20,
    max_lane=16384,
    max_inflight_dmas=4,
    donate=False,
):
    """Equivalent of x.view(*shape) for a contiguous tensor.

    Default: metadata-only XLA reshape (no data movement).  With
    force_copy=True the result is materialized by a Pallas copy kernel.
    """
    total = int(x.size)
    out_shape = _resolve_shape(total, shape)

    # Fast path (and the default): reshape of a contiguous array is a
    # metadata-only operation -- no HBM read/write at all.
    if not force_copy or total == 0:
        return jnp.reshape(x, out_shape)

    itemsize = jnp.dtype(x.dtype).itemsize
    # TODO(synk): sub-byte dtypes (int4/fp4) need a different sublane/packing rule.
    sublane = 8 * max(1, 4 // max(1, itemsize))  # 8 f32 / 16 bf16 / 32 int8,fp8
    min_unit = sublane * 128

    if total % min_unit != 0:
        # Flat size does not tile onto the native (sublane, 128) layout:
        # copy the whole buffer with one HBM->HBM DMA, then re-view (free).
        return jnp.reshape(_dma_copy(x, chunks=None), out_shape)

    # Lane-dense 2-D slab (rows, W): W a large multiple of 128, rows a multiple
    # of the packed sublane count -> every row chunk is tile aligned.
    W = _pick_lane_width(total, sublane, max_lane)
    rows = total // W
    slab = jnp.reshape(x, (rows, W))

    if copy_impl == "dma":
        # A few in-flight chunked DMAs keep multiple DMA engines busy while
        # skipping the VMEM round trip entirely.
        n = max(1, min(max_inflight_dmas, rows // sublane))
        rows_per_chunk = -(-rows // n)
        rows_per_chunk = -(-rows_per_chunk // sublane) * sublane
        chunks = []
        start = 0
        while start < rows:
            size = min(rows_per_chunk, rows - start)
            chunks.append((start, size))
            start += size
        copied = _dma_copy(slab, chunks)
    elif copy_impl == "vmem":
        copied = _vmem_pipelined_copy(
            slab, sublane, target_block_bytes, _vmem_capacity_bytes(), donate
        )
    else:
        raise ValueError(f"unknown copy_impl: {copy_impl!r}")

    # Final shape bookkeeping is a free metadata op (same element count).
    return jnp.reshape(copied, out_shape)


class Reshape:
    """Mirror of the PyTorch module: Reshape(*args)(x) == x.view(args).

    Note: unlike torch.Tensor.view this never aliases storage; the default
    path is XLA's metadata-only reshape, and force_copy=True materializes a
    copy with the Pallas kernel.
    """

    def __init__(self, *args, force_copy=False, copy_impl="dma"):
        self.shape = args
        self.force_copy = force_copy
        self.copy_impl = copy_impl

    def __call__(self, x):
        return pallas_reshape(
            x, self.shape, force_copy=self.force_copy, copy_impl=self.copy_impl
        )


if __name__ == "__main__":
    key = jax.random.PRNGKey(0)

    # 1) Default path: metadata-only reshape -- flatten NCHW before an FC layer.
    x = jax.random.normal(key, (2, 4, 16, 16), dtype=jnp.float32)
    ref = jnp.reshape(x, (2, -1))
    out = jax.block_until_ready(Reshape(2, -1)(x))
    assert out.shape == (2, 4 * 16 * 16) and out.dtype == x.dtype
    assert bool(jnp.all(out == ref))

    # 2) Forced materialized copy via direct HBM->HBM DMA (single chunk here).
    out_dma = jax.block_until_ready(
        Reshape(2, -1, force_copy=True, copy_impl="dma")(x)
    )
    assert bool(jnp.all(out_dma == ref))

    # 3) Slightly larger tensor: multi-chunk DMA and multi-step VMEM pipeline
    #    (max_lane / block size shrunk to force several chunks / grid steps).
    x3 = jax.random.normal(key, (8, 4, 32, 32), dtype=jnp.float32)
    ref3 = jnp.reshape(x3, (4, -1))
    out_dma3 = jax.block_until_ready(
        pallas_reshape(x3, (4, -1), force_copy=True, copy_impl="dma", max_lane=128)
    )
    assert bool(jnp.all(out_dma3 == ref3))
    out_vmem3 = jax.block_until_ready(
        pallas_reshape(
            x3, (4, -1), force_copy=True, copy_impl="vmem",
            target_block_bytes=4096, max_lane=128,
        )
    )
    assert bool(jnp.all(out_vmem3 == ref3))

    # 4) Packed dtype (bf16 -> 16-row sublane tiles) through the DMA copy.
    xb = x.astype(jnp.bfloat16)
    outb = jax.block_until_ready(Reshape(8, -1, force_copy=True)(xb))
    assert outb.dtype == jnp.bfloat16
    assert bool(jnp.all(outb == jnp.reshape(xb, (8, -1))))

    # 5) Misaligned flat size + forced copy -> single whole-buffer DMA.
    x5 = jax.random.normal(key, (3, 5, 7), dtype=jnp.float32)
    out5 = jax.block_until_ready(pallas_reshape(x5, (-1,), force_copy=True))
    assert bool(jnp.all(out5 == jnp.reshape(x5, (-1,))))

    print("KERNEL_OK")
</pallas_src>

<mosaic_0001>
module attributes {stable_mosaic.version = 11 : i64} {
  func.func @kernel(%arg0: memref<8x256xf32, #tpu.memory_space<any>>, %arg1: memref<8x256xf32, #tpu.memory_space<any>>, %arg2: memref<1x!tpu.dma_semaphore, #tpu.memory_space<semaphore_mem>>) attributes {dimension_semantics = [], scalar_prefetch = 0 : i64, scratch_operands = 1 : i64, tpu.core_type = #tpu.core_type<tc>} {
    %c0_i32 = arith.constant 0 : i32
    %c0_i32_0 = arith.constant 0 : i32
    %c0_i32_1 = arith.constant 0 : i32
    %0 = tpu.memref_slice %arg0[%c0_i32_0, %c0_i32_1] : memref<8x256xf32, #tpu.memory_space<any>> -> memref<8x256xf32, #tpu.memory_space<any>>
    %c0_i32_2 = arith.constant 0 : i32
    %c0_i32_3 = arith.constant 0 : i32
    %1 = tpu.memref_slice %arg1[%c0_i32_2, %c0_i32_3] : memref<8x256xf32, #tpu.memory_space<any>> -> memref<8x256xf32, #tpu.memory_space<any>>
    %2 = tpu.memref_slice %arg2[%c0_i32] : memref<1x!tpu.dma_semaphore, #tpu.memory_space<semaphore_mem>> -> memref<1x!tpu.dma_semaphore, #tpu.memory_space<semaphore_mem>>
    %3 = tpu.memref_squeeze %2 : memref<1x!tpu.dma_semaphore, #tpu.memory_space<semaphore_mem>> -> memref<!tpu.dma_semaphore, #tpu.memory_space<semaphore_mem>>
    tpu.enqueue_dma source(%0 : memref<8x256xf32, #tpu.memory_space<any>>) target(%1 : memref<8x256xf32, #tpu.memory_space<any>>) target_semaphore(%3 : memref<!tpu.dma_semaphore, #tpu.memory_space<semaphore_mem>>)
    %c0_i32_4 = arith.constant 0 : i32
    %c0_i32_5 = arith.constant 0 : i32
    %c0_i32_6 = arith.constant 0 : i32
    %4 = tpu.memref_slice %arg0[%c0_i32_5, %c0_i32_6] : memref<8x256xf32, #tpu.memory_space<any>> -> memref<8x256xf32, #tpu.memory_space<any>>
    %c0_i32_7 = arith.constant 0 : i32
    %c0_i32_8 = arith.constant 0 : i32
    %5 = tpu.memref_slice %arg1[%c0_i32_7, %c0_i32_8] : memref<8x256xf32, #tpu.memory_space<any>> -> memref<8x256xf32, #tpu.memory_space<any>>
    %6 = tpu.memref_slice %arg2[%c0_i32_4] : memref<1x!tpu.dma_semaphore, #tpu.memory_space<semaphore_mem>> -> memref<1x!tpu.dma_semaphore, #tpu.memory_space<semaphore_mem>>
    %7 = tpu.memref_squeeze %6 : memref<1x!tpu.dma_semaphore, #tpu.memory_space<semaphore_mem>> -> memref<!tpu.dma_semaphore, #tpu.memory_space<semaphore_mem>>
    tpu.wait_dma2 semaphore(%7 : memref<!tpu.dma_semaphore, #tpu.memory_space<semaphore_mem>>) src(%4 : memref<8x256xf32, #tpu.memory_space<any>>) dst(%5 : memref<8x256xf32, #tpu.memory_space<any>>)
    return
  }
}

</mosaic_0001>

<bundles_post_ra>
// kernel: tpu_custom_call.1
= control target key start
LH: loop header
LB: loop body
LE: loop exit
PB: predicated region body
PF: predicated region fallthrough
CT: control target
= control target key end

     0   :  { %s35_s6 = smov [#allocation2]   ;;  %s36_s7 = smov [#allocation3]   ;;  %s54_s0 = inlined_call_operand.hbm [shape: f32[8,256], index: 0, kind: input, shape index: {}]   ;;  %s55_s1 = inlined_call_operand.hbm [shape: f32[8,256], index: 1, kind: output, shape index: {}]  }
   0x1   :  { %s37_s8 = smov 0  }
   0x2   :  { %18 = dma.general %s54_s0, 256, %s55_s1, %s35_s6, %s36_s7, [#allocation4], %s37_s8, 0  }
   0x3   :  { %33 = dma.done.wait [#allocation2], 256 }
   0x4   :  { %34 = vsyncadd [#allocation2], 4294967040 }
   0x5   :  { %23 = vsyncmov [#allocation2] }
   0x8   :  { %s24_s13 = vpop.sfrf %23 }
   0x9   :  { %p29_p0 = scmp.ne.s32.totalorder %s24_s13, 0 }
   0xb   :  { %28 = shalt.err (%p29_p0)  }

</bundles_post_ra>
